<compile_context>
chip_gen: v6e
topology: v6e:2x2x1
jax: 0.10.0
libtpu: 0.0.40
codegen_flags: <defaults>
</compile_context>

<pallas_src>
import functools

import jax
import jax.numpy as jnp
from jax.experimental import pallas as pl
from jax.experimental.pallas import tpu as pltpu

_SUBLANE = 8
_LANE = 128


def _round_up(x, m):
    return (x + m - 1) // m * m


# ----------------------------------------------------------------------------
# Point-structure glue (plain JAX; bookkeeping only, no heavy compute)
# ----------------------------------------------------------------------------
def batch2offset(batch, num_batches):
    bincount = jnp.bincount(batch, length=num_batches)
    return jnp.cumsum(bincount).astype(jnp.int32)


def make_point(feat, batch, num_batches):
    return {"feat": feat, "batch": batch, "offset": batch2offset(batch, num_batches)}


# ----------------------------------------------------------------------------
# Fused "stem" kernel: Linear (+ LayerNorm) (+ GELU) (+ residual add), row-wise.
# ----------------------------------------------------------------------------
def _rowwise_dot(x, w):
    """x: (T, K), w: (K, C) -> (T, C) with f32 accumulate.

    For tiny K the MXU systolic pass is pure overhead: use an unrolled VPU MAC.
    For the usual GridUnpooling widths (K = 32..512) the MXU is appropriate.
    """
    k = x.shape[-1]
    if k <= 8:
        xf = x.astype(jnp.float32)
        wf = w.astype(jnp.float32)
        acc = xf[:, 0:1] * wf[0:1, :]
        for j in range(1, k):
            acc = acc + xf[:, j:j + 1] * wf[j:j + 1, :]
        return acc
    return jnp.dot(x, w, preferred_element_type=jnp.float32)


def _stem_kernel(*refs, use_norm, use_act, gelu_approx, eps, c_valid, has_add):
    if has_add:
        x_ref, w_ref, vec_ref, add_ref, o_ref = refs
    else:
        x_ref, w_ref, vec_ref, o_ref = refs
        add_ref = None

    w = w_ref[...]                              # (K, C_pad), resident
    x = x_ref[...]                              # (T, K) activation rows
    if x.dtype != w.dtype:                      # keep the matmul in the weight dtype
        x = x.astype(w.dtype)
    v = vec_ref[...]                            # (8, C_pad) f32: bias / gamma / beta

    y = _rowwise_dot(x, w) + v[0:1, :]          # f32 accumulate + bias

    if use_norm:
        # Single-pass LayerNorm statistics over the *valid* C_out columns.
        # Padded columns are exactly zero (zero weight columns + zero bias), so
        # plain sums over C_pad equal sums over C_out; divide by the true C_out.
        inv_c = jnp.float32(1.0 / c_valid)
        mean = jnp.sum(y, axis=-1, keepdims=True) * inv_c
        ex2 = jnp.sum(y * y, axis=-1, keepdims=True) * inv_c
        var = ex2 - mean * mean
        y = (y - mean) * jax.lax.rsqrt(var + eps) * v[1:2, :] + v[2:3, :]
    if use_act:
        y = jax.nn.gelu(y, approximate=gelu_approx)
    if has_add:
        y = y + add_ref[...].astype(jnp.float32)

    o_ref[...] = y.astype(o_ref.dtype)


def _fused_stem(x, w, vec, *, add=None, use_norm, use_act, gelu_approx, eps,
                c_valid, tile_rows, out_dtype):
    """One pallas_call: out[i, :] = act(norm(x[i, :] @ w + bias)) (+ add[i, :])."""
    n, k = x.shape
    c_pad = w.shape[1]
    out_dtype = jnp.dtype(out_dtype)

    # Big tiles amortize the ~0.35 us/step pipeline overhead; no >=2-step cap
    # (it only starved single-TC chips). Ragged tail handled by boundary masking.
    tile = max(_SUBLANE, min(_round_up(tile_rows, _SUBLANE), _round_up(n, _SUBLANE)))
    grid = (pl.cdiv(n, tile),)

    kernel = functools.partial(
        _stem_kernel, use_norm=use_norm, use_act=use_act, gelu_approx=gelu_approx,
        eps=eps, c_valid=c_valid, has_add=add is not None)

    in_specs = [
        pl.BlockSpec((tile, k), lambda i: (i, 0)),      # activation rows
        pl.BlockSpec((k, c_pad), lambda i: (0, 0)),     # weight (resident)
        pl.BlockSpec((8, c_pad), lambda i: (0, 0)),     # bias + LN affine (resident)
    ]
    args = [x, w, vec]
    if add is not None:
        in_specs.append(pl.BlockSpec((tile, c_pad), lambda i: (i, 0)))
        args.append(add)

    bytes_accessed = (x.dtype.itemsize * n * k
                      + w.dtype.itemsize * k * c_pad
                      + 4 * 8 * c_pad
                      + out_dtype.itemsize * n * c_pad)
    if add is not None:
        bytes_accessed += add.dtype.itemsize * n * c_pad
    flops = 2 * n * k * c_pad + (n * c_pad if add is not None else 0)
    cost = pl.CostEstimate(flops=int(flops),
                           transcendentals=int(n * c_pad) if use_act else 0,
                           bytes_accessed=int(bytes_accessed))

    return pl.pallas_call(
        kernel,
        out_shape=jax.ShapeDtypeStruct((n, c_pad), out_dtype),
        grid=grid,
        in_specs=in_specs,
        out_specs=pl.BlockSpec((tile, c_pad), lambda i: (i, 0)),
        compiler_params=pltpu.CompilerParams(
            dimension_semantics=("parallel",),
            vmem_limit_bytes=32 * 1024 * 1024,   # safe on v5e/v6e and v7x (64 MiB/TC)
        ),
        cost_estimate=cost,
    )(*args)


# ----------------------------------------------------------------------------
# One-time parameter packing (hoisted out of the per-call forward)
# ----------------------------------------------------------------------------
def prepare_grid_unpooling_params(params, *, param_dtype=jnp.float32):
    """Pack GridUnpooling parameters into MXU / lane-friendly layout, once.

    * weights transposed to (K, C_out_pad), with C_out zero-padded up to a multiple
      of 128 so kernel stores stay full-lane-width for any decoder width;
    * bias + LayerNorm affine consolidated into one (8, C_out_pad) f32 block per
      branch (row 0 = bias, row 1 = gamma, row 2 = beta, rest zero);
    * optional bf16 weight storage for a bandwidth-bound bf16 data path.
    """
    w_proj = jnp.asarray(params["proj_weight"], jnp.float32)   # (C_out, C_in)
    w_skip = jnp.asarray(params["skip_weight"], jnp.float32)   # (C_out, C_skip)
    c_out = w_proj.shape[0]
    c_pad = _round_up(c_out, _LANE)

    def prep_w(w):                                             # (C_out, K) -> (K, C_pad)
        wt = jnp.transpose(w)
        if c_pad != c_out:
            wt = jnp.pad(wt, ((0, 0), (0, c_pad - c_out)))
        return wt.astype(param_dtype)

    ones = jnp.ones((c_out,), jnp.float32)
    zeros = jnp.zeros((c_out,), jnp.float32)

    def row(x, default):
        r = jnp.asarray(x, jnp.float32) if x is not None else default
        return jnp.pad(r.reshape(1, c_out), ((0, 0), (0, c_pad - c_out)))

    def prep_vec(bias, gamma, beta):
        rows = jnp.concatenate([row(bias, zeros), row(gamma, ones), row(beta, zeros)],
                               axis=0)
        return jnp.pad(rows, ((0, _SUBLANE - 3), (0, 0)))      # (8, C_pad) f32

    return {
        "c_out": c_out,
        "w_proj": prep_w(w_proj),
        "w_skip": prep_w(w_skip),
        "vec_proj": prep_vec(params["proj_bias"],
                             params.get("proj_norm_weight"),
                             params.get("proj_norm_bias")),
        "vec_skip": prep_vec(params["skip_bias"],
                             params.get("skip_norm_weight"),
                             params.get("skip_norm_bias")),
    }


# ----------------------------------------------------------------------------
# GridUnpooling.forward on dict-based Point structures
# ----------------------------------------------------------------------------
def grid_unpooling_forward(point, prepared, *, use_norm=False, use_act=False,
                           gelu_approx=False, eps=1e-5, tile_rows=2048,
                           out_dtype=None, traceable=False):
    assert "pooling_parent" in point and "pooling_inverse" in point
    point = dict(point)
    parent = dict(point.pop("pooling_parent"))
    inverse = point["pooling_inverse"]

    point_feat = point["feat"]                       # (N_point,  C_in)
    parent_feat = parent["feat"]                     # (N_parent, C_skip)
    c_out = prepared["c_out"]
    out_dtype = jnp.dtype(parent_feat.dtype if out_dtype is None else out_dtype)

    # 1) proj branch at N_point granularity (same ordering as PyTorch), fully fused.
    proj_out = _fused_stem(point_feat, prepared["w_proj"], prepared["vec_proj"],
                           use_norm=use_norm, use_act=use_act, gelu_approx=gelu_approx,
                           eps=eps, c_valid=c_out, tile_rows=tile_rows,
                           out_dtype=out_dtype)      # (N_point, C_pad)

    # 2) Many-to-one row gather of the *projected* rows.
    # TODO(synk): the arbitrary row gather has no block-granular Pallas equivalent
    # (per-row DMAs of ~C_out*2-4 bytes are too small to beat XLA's gather), so it
    # stays in the wrapper — but now on C_out-wide rows, not C_in-wide ones.
    gathered = jnp.take(proj_out, inverse, axis=0)   # (N_parent, C_pad)

    # 3) skip branch + residual add at N_parent granularity, fully fused.
    out = _fused_stem(parent_feat, prepared["w_skip"], prepared["vec_skip"],
                      add=gathered, use_norm=use_norm, use_act=use_act,
                      gelu_approx=gelu_approx, eps=eps, c_valid=c_out,
                      tile_rows=tile_rows, out_dtype=out_dtype)

    if out.shape[1] != c_out:                        # only when C_out % 128 != 0
        out = out[:, :c_out]

    parent["feat"] = out
    # TODO(synk): parent.sparse_conv_feat.replace_feature (spconv sparse tensor) is
    # data-structure bookkeeping with no Pallas equivalent; consumers read parent["feat"].
    if traceable:
        parent["unpooling_parent"] = point
    return parent


# ----------------------------------------------------------------------------
# Pure-JAX reference (mirrors the PyTorch forward exactly)
# ----------------------------------------------------------------------------
def grid_unpooling_reference(point_feat, parent_feat, inverse, params, *,
                             use_norm=False, use_act=False, gelu_approx=False,
                             eps=1e-5):
    hi = jax.lax.Precision.HIGHEST

    def stem(x, w, b, nw, nb):
        y = jnp.dot(x.astype(jnp.float32), jnp.asarray(w, jnp.float32).T,
                    precision=hi) + b
        if use_norm:
            mean = jnp.mean(y, axis=-1, keepdims=True)
            var = jnp.mean(jnp.square(y - mean), axis=-1, keepdims=True)
            y = (y - mean) / jnp.sqrt(var + eps) * nw + nb
        if use_act:
            y = jax.nn.gelu(y, approximate=gelu_approx)
        return y

    yp = stem(point_feat, params["proj_weight"], params["proj_bias"],
              params.get("proj_norm_weight"), params.get("proj_norm_bias"))
    ys = stem(parent_feat, params["skip_weight"], params["skip_bias"],
              params.get("skip_norm_weight"), params.get("skip_norm_bias"))
    return ys + yp[inverse]


if __name__ == "__main__":
    key = jax.random.PRNGKey(0)

    # Small shapes consistent with the module: pooled (point) / unpooled (parent)
    # point counts and decoder-ish channel widths.
    n_point, n_parent = 96, 300
    num_batches = 2
    in_channels, skip_channels, out_channels = 64, 32, 128

    kp, kq, ki, kw1, kw2 = jax.random.split(key, 5)
    point_feat = jax.random.normal(kp, (n_point, in_channels), jnp.float32)
    parent_feat = jax.random.normal(kq, (n_parent, skip_channels), jnp.float32)
    inverse = jax.random.randint(ki, (n_parent,), 0, n_point, dtype=jnp.int32)

    point_batch = (jnp.arange(n_point) * num_batches // n_point).astype(jnp.int32)
    parent_batch = (jnp.arange(n_parent) * num_batches // n_parent).astype(jnp.int32)

    def make_params(k, c_in, c_skip, c_out):
        ks = jax.random.split(k, 8)
        return {
            "proj_weight": 0.1 * jax.random.normal(ks[0], (c_out, c_in), jnp.float32),
            "proj_bias": 0.05 * jax.random.normal(ks[1], (c_out,), jnp.float32),
            "skip_weight": 0.1 * jax.random.normal(ks[2], (c_out, c_skip), jnp.float32),
            "skip_bias": 0.05 * jax.random.normal(ks[3], (c_out,), jnp.float32),
            "proj_norm_weight": 1.0 + 0.05 * jax.random.normal(ks[4], (c_out,), jnp.float32),
            "proj_norm_bias": 0.05 * jax.random.normal(ks[5], (c_out,), jnp.float32),
            "skip_norm_weight": 1.0 + 0.05 * jax.random.normal(ks[6], (c_out,), jnp.float32),
            "skip_norm_bias": 0.05 * jax.random.normal(ks[7], (c_out,), jnp.float32),
        }

    def make_point_dict(pf, prf):
        return {
            "feat": pf,
            "batch": point_batch,
            "offset": batch2offset(point_batch, num_batches),
            "pooling_inverse": inverse,
            "pooling_parent": make_point(prf, parent_batch, num_batches),
        }

    params = make_params(kw1, in_channels, skip_channels, out_channels)
    prepared = prepare_grid_unpooling_params(params)

    # In-kernel matmul runs at Mosaic's default MXU precision (f32 operands may be
    # decomposed into bf16 passes); reference uses Precision.HIGHEST -> loose-ish tol.
    TOL = dict(atol=2e-2, rtol=2e-2)

    # 1) Default GridUnpooling (norm_layer=None, act_layer=None).
    out1 = grid_unpooling_forward(make_point_dict(point_feat, parent_feat), prepared,
                                  use_norm=False, use_act=False)["feat"]
    out1 = jax.block_until_ready(out1)
    ref1 = grid_unpooling_reference(point_feat, parent_feat, inverse, params,
                                    use_norm=False, use_act=False)
    assert out1.shape == (n_parent, out_channels)
    assert jnp.allclose(out1, ref1, **TOL), "linear path mismatch"

    # 2) norm_layer=LayerNorm, act_layer=GELU (fused in-kernel epilogue).
    out2 = grid_unpooling_forward(make_point_dict(point_feat, parent_feat), prepared,
                                  use_norm=True, use_act=True)["feat"]
    out2 = jax.block_until_ready(out2)
    ref2 = grid_unpooling_reference(point_feat, parent_feat, inverse, params,
                                    use_norm=True, use_act=True)
    assert jnp.allclose(out2, ref2, **TOL), "norm+act path mismatch"

    # 3) Non-multiple-of-128 decoder width (C_out = 96): weights lane-padded to 128
    #    so stores stay full-width; LN statistics still use the true 96 columns.
    params96 = make_params(kw2, in_channels, skip_channels, 96)
    prepared96 = prepare_grid_unpooling_params(params96)
    out3 = grid_unpooling_forward(make_point_dict(point_feat, parent_feat), prepared96,
                                  use_norm=True, use_act=True)["feat"]
    out3 = jax.block_until_ready(out3)
    ref3 = grid_unpooling_reference(point_feat, parent_feat, inverse, params96,
                                    use_norm=True, use_act=True)
    assert out3.shape == (n_parent, 96)
    assert jnp.allclose(out3, ref3, **TOL), "lane-padded C_out path mismatch"

    # 4) bf16 I/O path (halves HBM traffic; bf16 MXU inputs, f32 accumulate + epilogue).
    prepared_bf16 = prepare_grid_unpooling_params(params, param_dtype=jnp.bfloat16)
    out4 = grid_unpooling_forward(
        make_point_dict(point_feat.astype(jnp.bfloat16), parent_feat.astype(jnp.bfloat16)),
        prepared_bf16, use_norm=True, use_act=True)["feat"]
    out4 = jax.block_until_ready(out4)
    assert out4.dtype == jnp.bfloat16
    assert jnp.allclose(out4.astype(jnp.float32), out2, atol=1e-1, rtol=1e-1), \
        "bf16 path mismatch"

    print("KERNEL_OK")
</pallas_src>

<mosaic_0001>
module attributes {stable_mosaic.version = 11 : i64} {
  func.func @_stem_kernel(%arg0: i32, %arg1: memref<96x64xf32, #tpu.memory_space<vmem>>, %arg2: memref<64x128xf32, #tpu.memory_space<vmem>>, %arg3: memref<8x128xf32, #tpu.memory_space<vmem>>, %arg4: memref<96x128xf32, #tpu.memory_space<vmem>>) attributes {dimension_semantics = [#tpu.dimension_semantics<parallel>], iteration_bounds = array<i64: 1>, scalar_prefetch = 0 : i64, scratch_operands = 0 : i64, tpu.core_type = #tpu.core_type<tc>, window_params = [{transform_indices = @transform_0, window_bounds = array<i64: 96, 64>}, {pipeline_mode = #tpu.pipeline_mode<synchronous>, transform_indices = @transform_1, window_bounds = array<i64: 64, 128>}, {pipeline_mode = #tpu.pipeline_mode<synchronous>, transform_indices = @transform_2, window_bounds = array<i64: 8, 128>}, {transform_indices = @transform_3, window_bounds = array<i64: 96, 128>}]} {
    %c0 = arith.constant 0 : index
    %c0_0 = arith.constant 0 : index
    %0 = vector.load %arg2[%c0, %c0_0] : memref<64x128xf32, #tpu.memory_space<vmem>>, vector<64x128xf32>
    %c0_1 = arith.constant 0 : index
    %c0_2 = arith.constant 0 : index
    %1 = vector.load %arg1[%c0_1, %c0_2] : memref<96x64xf32, #tpu.memory_space<vmem>>, vector<96x64xf32>
    %c0_3 = arith.constant 0 : index
    %c0_4 = arith.constant 0 : index
    %2 = vector.load %arg3[%c0_3, %c0_4] : memref<8x128xf32, #tpu.memory_space<vmem>>, vector<8x128xf32>
    %cst = arith.constant dense<0.000000e+00> : vector<96x128xf32>
    %3 = tpu.matmul %1, %0, %cst {dimension_numbers = #tpu.dot_dimension_numbers<[1], [0], [0], [1], [0, 0, 1, 1], [], []>} : vector<96x64xf32>, vector<64x128xf32>, vector<96x128xf32> -> vector<96x128xf32>
    %4 = vector.extract_strided_slice %2 {offsets = [0, 0], sizes = [1, 128], strides = [1, 1]} : vector<8x128xf32> to vector<1x128xf32>
    %5 = vector.broadcast %4 : vector<1x128xf32> to vector<96x128xf32>
    %6 = arith.addf %3, %5 : vector<96x128xf32>
    %c0_5 = arith.constant 0 : index
    %c0_6 = arith.constant 0 : index
    %7 = vector.load %arg4[%c0_5, %c0_6] : memref<96x128xf32, #tpu.memory_space<vmem>>, vector<96x128xf32>
    tpu.vector_store %arg4[%c0_5, %c0_6], %6 {strides = array<i32>} : memref<96x128xf32, #tpu.memory_space<vmem>>, vector<96x128xf32>,
    return
  }
  func.func @transform_0(%arg0: i32) -> (i32, i32) {
    %c0_i32 = arith.constant 0 : i32
    %c0_i32_0 = arith.constant 0 : i32
    return %arg0, %c0_i32 : i32, i32
  }
  func.func @transform_1(%arg0: i32) -> (i32, i32) {
    %c0_i32 = arith.constant 0 : i32
    %c0_i32_0 = arith.constant 0 : i32
    %c0_i32_1 = arith.constant 0 : i32
    return %c0_i32, %c0_i32_0 : i32, i32
  }
  func.func @transform_2(%arg0: i32) -> (i32, i32) {
    %c0_i32 = arith.constant 0 : i32
    %c0_i32_0 = arith.constant 0 : i32
    %c0_i32_1 = arith.constant 0 : i32
    return %c0_i32, %c0_i32_0 : i32, i32
  }
  func.func @transform_3(%arg0: i32) -> (i32, i32) {
    %c0_i32 = arith.constant 0 : i32
    %c0_i32_0 = arith.constant 0 : i32
    return %arg0, %c0_i32 : i32, i32
  }
}

</mosaic_0001>

<bundles_post_ra>
// kernel: tpu_custom_call.1
= control target key start
LH: loop header
LB: loop body
LE: loop exit
PB: predicated region body
PF: predicated region fallthrough
CT: control target
= control target key end

     0   :  { %s438_s0 = inlined_call_operand.vmem [shape: f32[96,64], index: 0, kind: input, shape index: {}]   ;;  %s439_s1 = inlined_call_operand.vmem [shape: f32[64,128], index: 1, kind: input, shape index: {}]   ;;  %s440_s2 = inlined_call_operand.vmem [shape: f32[8,128], index: 2, kind: input, shape index: {}]   ;;  %s441_s3 = inlined_call_operand.hbm [shape: f32[96,128], index: 3, kind: output, shape index: {}]  }
   0x1   :  { %v22_v0 = vld [vmem:[%s439_s1 + $0x38] sm:$0xff]  ;;  %v21_v1 = vld [vmem:[%s439_s1 + $0x30] sm:$0xff]  ;;  %v20_v2 = vld [vmem:[%s439_s1 + $0x28] sm:$0xff] }
   0x2   :  { %262 = vmatprep.subr.mxu0 %v22_v0  ;;  %296 = vmatprep.subr.mxu1 %v22_v0  ;;  %v19_v3 = vld [vmem:[%s439_s1 + $0x20] sm:$0xff]  ;;  %v18_v4 = vld [vmem:[%s439_s1 + $0x18] sm:$0xff] }
   0x3   :  { %263 = vmatpush3.msra.mxu0 %v22_v0  ;;  %304 = vmatpush3.msra.mxu1 %v22_v0 }
   0x4   :  { %264 = vmatprep.subr.mxu0 %v21_v1  ;;  %297 = vmatprep.subr.mxu1 %v21_v1 }
   0x5   :  { %265 = vmatpush3.msra.mxu0 %v21_v1  ;;  %305 = vmatpush3.msra.mxu1 %v21_v1 }
   0x6   :  { %266 = vmatprep.subr.mxu0 %v20_v2  ;;  %298 = vmatprep.subr.mxu1 %v20_v2 }
   0x7   :  { %267 = vmatpush3.msra.mxu0 %v20_v2  ;;  %306 = vmatpush3.msra.mxu1 %v20_v2 }
   0x8   :  { %268 = vmatprep.subr.mxu0 %v19_v3  ;;  %299 = vmatprep.subr.mxu1 %v19_v3 }
   0x9   :  { %8 = vsyncpa [#allocation3], 0  ;;  %269 = vmatpush3.msra.mxu0 %v19_v3  ;;  %307 = vmatpush3.msra.mxu1 %v19_v3  ;;  %v17_v5 = vld [vmem:[%s439_s1 + $0x10] sm:$0xff]  ;;  %v16_v6 = vld [vmem:[%s439_s1 + $0x8] sm:$0xff]  ;;  %vm40_vm0 = vcmask 523264   ;;  %v36_v20 = vlaneseq }
   0xa   :  { %270 = vmatprep.subr.mxu0 %v18_v4  ;;  %300 = vmatprep.subr.mxu1 %v18_v4  ;;  %v15_v7 = vld [vmem:[%s439_s1] sm:$0xff]  ;;  %v29_v9 = vld [vmem:[%s438_s0 + $0x30] sm:$0xff]  ;;  %v24_v10 = vld [vmem:[%s438_s0 + $0x8] sm:$0xff] }
   0xb   :  { %271 = vmatpush3.msra.mxu0 %v18_v4  ;;  %308 = vmatpush3.msra.mxu1 %v18_v4  ;;  %v23_v8 = vld [vmem:[%s438_s0] sm:$0xff]  ;;  %v30_v11 = vld [vmem:[%s438_s0 + $0x38] sm:$0xff]  ;;  %v25_v12 = vld [vmem:[%s438_s0 + $0x10] sm:$0xff]  ;;  %v37_v21 = vshrl.u32 %v36_v20, 7 }
   0xc   :  { %272 = vmatprep.subr.mxu0 %v17_v5  ;;  %301 = vmatprep.subr.mxu1 %v17_v5  ;;  %v31_v13 = vld [vmem:[%s438_s0 + $0x40] sm:$0xff]  ;;  %v26_v14 = vld [vmem:[%s438_s0 + $0x18] sm:$0xff]  ;;  %v32_v15 = vld [vmem:[%s438_s0 + $0x48] sm:$0xff] }
   0xd   :  { %273 = vmatpush3.msra.mxu0 %v17_v5  ;;  %309 = vmatpush3.msra.mxu1 %v17_v5  ;;  %v27_v16 = vld [vmem:[%s438_s0 + $0x20] sm:$0xff]  ;;  %v33_v17 = vld [vmem:[%s438_s0 + $0x50] sm:$0xff]  ;;  %v28_v18 = vld [vmem:[%s438_s0 + $0x28] sm:$0xff]  ;;  %v38_v22 = vsub.s32 0, %v37_v21 }
   0xe   :  { %274 = vmatprep.subr.mxu0 %v16_v6  ;;  %302 = vmatprep.subr.mxu1 %v16_v6  ;;  %v34_v19 = vld [vmem:[%s438_s0 + $0x58] sm:$0xff]  ;;  %v35_v23 = vld [vmem:[%s440_s2] sm:$0xff]  ;;  %s337_s0 = smov [#allocation2]  }
   0xf   :  { %275 = vmatpush3.msra.mxu0 %v16_v6  ;;  %310 = vmatpush3.msra.mxu1 %v16_v6  ;;  %v39_v24 = vrot.slane %v35_v23, %v38_v22  ;;  %s219_s2 = sshll.u32 %s337_s0, 4  ;;  %s220_s2 = int_to_ptr.vmem [resolvable:$true] %s219_s2 }
  0x10   :  { %276 = vmatprep.subr.mxu0 %v15_v7  ;;  %303 = vmatprep.subr.mxu1 %v15_v7  ;;  %s315_s26 = scalar_lea.vmem %s220_s2, 1536  ;;  %p320_p1 = scmp.lt.s32.totalorder %s220_s2, %s220_s2 }
  0x11   :  { %277 = vmatpush3.msra.mxu0 %v15_v7  ;;  %311 = vmatpush3.msra.mxu1 %v15_v7  ;;  %p316_p0 = scmp.ne.s32.totalorder %s220_s2, %s315_s26  ;;  %p321_p2 = scmp.lt.s32.totalorder %s315_s26, %s315_s26 }
  0x12   :  { %278 = vmatprep.mubr.msk.f32.mxu0 %vm40_vm0, %v23_v8  ;;  %287 = vmatprep.mubr.msk.f32.mxu1 %vm40_vm0, %v29_v9 }
  0x13   :  { %279 = vmatmul.mubr.msk.f32.vlgmr.msra.gmra.mxu0 %vm40_vm0, %v24_v10  ;;  %288 = vmatmul.mubr.msk.f32.vlgmr.msra.gmra.mxu1 %vm40_vm0, %v30_v11  ;;  %p322_p3 = por %p321_p2, %p320_p1 }
  0x14   :  { %281 = vmatprep.mubr.msk.f32.mxu0 %vm40_vm0, %v25_v12  ;;  %290 = vmatprep.mubr.msk.f32.mxu1 %vm40_vm0, %v31_v13 }
  0x15   :  { %p323_p4 = pnand %p322_p3, %p316_p0 }
  0x17   :  { %282 = vmatmul.mubr.msk.f32.gmra.mxu0 %vm40_vm0, %v26_v14  ;;  %291 = vmatmul.mubr.msk.f32.gmra.mxu1 %vm40_vm0, %v32_v15 }
  0x18   :  { %284 = vmatprep.mubr.msk.f32.mxu0 %vm40_vm0, %v27_v16  ;;  %293 = vmatprep.mubr.msk.f32.mxu1 %vm40_vm0, %v33_v17 }
  0x1b   :  { %285 = vmatmul.mubr.msk.f32.gmra.mxu0 %vm40_vm0, %v28_v18  ;;  %294 = vmatmul.mubr.msk.f32.gmra.mxu1 %vm40_vm0, %v34_v19 }
  0xd3   :  { %v280_v25 = vpop.f32.mrf.mxu0  ;;  %v289_v26 = vpop.f32.mrf.mxu1 }
  0xd4   :  { %v149_v27 = vadd.f32 %v280_v25, %v39_v24  ;;  %v179_v28 = vadd.f32 %v289_v26, %v39_v24 }
  0xd5   :  { %v143_v29 = vpop.f32.mrf.mxu0  ;;  %v173_v30 = vpop.f32.mrf.mxu1 }
  0xd6   :  { %203 = vst [vmem:[#allocation2 + $0x8] sm:$0xff] %v149_v27  ;;  %209 = vst [vmem:[#allocation2 + $0x38] sm:$0xff] %v179_v28  ;;  %v144_v31 = vadd.f32 %v143_v29, %v39_v24  ;;  %v174_v32 = vadd.f32 %v173_v30, %v39_v24 }
  0xd7   :  { %v283_v33 = vpop.f32.mrf.mxu0  ;;  %v292_v34 = vpop.f32.mrf.mxu1 }
  0xd8   :  { %202 = vst [vmem:[#allocation2] sm:$0xff] %v144_v31  ;;  %208 = vst [vmem:[#allocation2 + $0x30] sm:$0xff] %v174_v32  ;;  %v159_v35 = vadd.f32 %v283_v33, %v39_v24  ;;  %v189_v36 = vadd.f32 %v292_v34, %v39_v24 }
  0xd9   :  { %v153_v37 = vpop.f32.mrf.mxu0  ;;  %v183_v38 = vpop.f32.mrf.mxu1 }
  0xda   :  { %205 = vst [vmem:[#allocation2 + $0x18] sm:$0xff] %v159_v35  ;;  %211 = vst [vmem:[#allocation2 + $0x48] sm:$0xff] %v189_v36  ;;  %v154_v39 = vadd.f32 %v153_v37, %v39_v24  ;;  %v184_v40 = vadd.f32 %v183_v38, %v39_v24 }
  0xdb   :  { %v286_v41 = vpop.f32.mrf.mxu0  ;;  %v295_v42 = vpop.f32.mrf.mxu1 }
  0xdc   :  { %204 = vst [vmem:[#allocation2 + $0x10] sm:$0xff] %v154_v39  ;;  %210 = vst [vmem:[#allocation2 + $0x40] sm:$0xff] %v184_v40  ;;  %v169_v43 = vadd.f32 %v286_v41, %v39_v24  ;;  %v199_v44 = vadd.f32 %v295_v42, %v39_v24 }
  0xdd   :  { %v163_v45 = vpop.f32.mrf.mxu0  ;;  %v193_v46 = vpop.f32.mrf.mxu1 }
  0xde   :  { %207 = vst [vmem:[#allocation2 + $0x28] sm:$0xff] %v169_v43  ;;  %213 = vst [vmem:[#allocation2 + $0x58] sm:$0xff] %v199_v44  ;;  %v164_v47 = vadd.f32 %v163_v45, %v39_v24  ;;  %v194_v48 = vadd.f32 %v193_v46, %v39_v24 }
  0xe0   :  { %206 = vst [vmem:[#allocation2 + $0x20] sm:$0xff] %v164_v47  ;;  %212 = vst [vmem:[#allocation2 + $0x50] sm:$0xff] %v194_v48 }
  0xe1   :  { %326 = shalt.err (!%p323_p4)
}
  0xe2   :  { %s338_s27 = smov 128   ;;  %s339_s28 = smov 8  }
  0xe3   :  { %225 = dma.vmem_to_hbm [thread:$0]  %s220_s2, 1536, %s441_s3, [#allocation3], %s338_s27, %s338_s27, %s339_s28  }
  0xe4   :  { %335 = dma.done.wait [#allocation3], 1536  }
  0xe5   :  { %336 = vsyncadd [#allocation3], 4294965760 }
  0xe6   :  { %229 = vsyncpa [#allocation3], 1 }

</bundles_post_ra>
